<compile_context>
chip_gen: v7x
topology: tpu7x:2x2x1
jax: 0.10.0
libtpu: 0.0.40
codegen_flags: <defaults>
</compile_context>

<pallas_src>
import numpy as np
import jax
import jax.numpy as jnp
from jax import lax
from jax.experimental import pallas as pl
from jax.experimental.pallas import tpu as pltpu

_LANE = 128  # TPU vreg lane width


# --------------------------------------------------------------------------- #
# Kernel: fused (folded-table lookup + tiny weighted reduce + sigmoid) on one
# lane-dense batch tile.
# --------------------------------------------------------------------------- #
def folded_classify_kernel(ids_ref, cont_ref, table_ref, wcont_ref, bias_ref, o_ref):
    # ids_ref:   [C, TB]  int32      streamed (batch on lanes)
    # cont_ref:  [F, TB]  f32/bf16   streamed (batch on lanes)
    # table_ref: [max_types, C] f32  VMEM-resident folded logit table
    # wcont_ref: [F, 1]   f32        VMEM-resident folded continuous weights
    # bias_ref:  [1, 1]   f32        SMEM scalar (folded bias)
    # o_ref:     [1, TB]  f32        lane-dense output tile
    n_types, n_cat = table_ref.shape
    tb = ids_ref.shape[1]

    ids = ids_ref[...]
    tbl = table_ref[...]
    # Upcast once; keep all in-kernel math in f32 (v5e has no bf16 VALU/EUP).
    cont = cont_ref[...].astype(jnp.float32)

    # Continuous contribution: per-lane multiply + sublane reduce. K (=cont_nbr)
    # is tiny, so the MXU is unnecessary; VPU/XLU have plenty of slack here.
    logit = jnp.sum(cont * wcont_ref[...], axis=0, keepdims=True)            # [1, TB]

    # Categorical contribution: fused table lookup realized as a per-lane
    # one-hot (compare/select) against the tiny folded table + sublane reduce.
    t_iota = lax.broadcasted_iota(jnp.int32, (n_types, tb), 0)               # hoisted
    for f in range(n_cat):                                                   # tiny static loop
        hit = ids[f:f + 1, :] == t_iota                                      # [n_types, TB]
        logit = logit + jnp.sum(jnp.where(hit, tbl[:, f:f + 1], 0.0),
                                axis=0, keepdims=True)

    o_ref[...] = jax.nn.sigmoid(logit + bias_ref[0, 0])                      # logistic -> EUP


# --------------------------------------------------------------------------- #
# Parameter construction (mirrors the module's __init__ shapes).
# --------------------------------------------------------------------------- #
def init_params(cont_nbr, cat_nbr, emd_dim, max_types, hidden_size=16, seed=0):
    hidden_list = 2 ** np.arange(max(np.ceil(np.log2(hidden_size)), 2) + 1)[::-1]
    hidden_list = [int(h) for h in hidden_list]                # e.g. [16, 8, 4, 2, 1]
    dims = [cont_nbr + cat_nbr * emd_dim] + hidden_list

    key = jax.random.PRNGKey(seed)
    keys = jax.random.split(key, 1 + 2 * (len(dims) - 1))

    embedding = jax.random.normal(keys[0], (max_types, emd_dim), jnp.float32)

    weights, biases = [], []
    for i in range(len(dims) - 1):
        bound = 1.0 / float(np.sqrt(dims[i]))                   # PyTorch Linear default
        w = jax.random.uniform(keys[1 + 2 * i], (dims[i], dims[i + 1]),
                               jnp.float32, -bound, bound)
        b = jax.random.uniform(keys[2 + 2 * i], (1, dims[i + 1]),
                               jnp.float32, -bound, bound)
        weights.append(w)
        biases.append(b)
    return {"embedding": embedding, "weights": weights, "biases": biases}


def fold_params(params, cont_nbr, cat_nbr, emd_dim):
    """Fold embedding + the activation-free Linear chain into (table, w_cont, b_eff).

    Only valid because the nn.Sequential has NO nonlinearities between Linears
    and Dropout is identity in eval mode (guarded in the forward wrapper).
    Folding is done in float64 on host (review correctness note), cast to f32.
    """
    ws = [np.asarray(w, dtype=np.float64) for w in params["weights"]]
    bs = [np.asarray(b, dtype=np.float64) for b in params["biases"]]
    emb = np.asarray(params["embedding"], dtype=np.float64)

    w_eff = ws[0]
    b_eff = bs[0]
    for w, b in zip(ws[1:], bs[1:]):
        w_eff = w_eff @ w
        b_eff = b_eff @ w + b
    assert w_eff.shape == (cont_nbr + cat_nbr * emd_dim, 1)
    assert b_eff.shape == (1, 1)

    w_cat = w_eff[:cat_nbr * emd_dim, 0].reshape(cat_nbr, emd_dim)
    table = emb @ w_cat.T                                      # [max_types, cat_nbr]
    w_cont = w_eff[cat_nbr * emd_dim:, 0].reshape(cont_nbr, 1)

    return {
        "table": jnp.asarray(table, jnp.float32),
        "w_cont": jnp.asarray(w_cont, jnp.float32),
        "bias": jnp.asarray(b_eff, jnp.float32),
    }


# --------------------------------------------------------------------------- #
# Forward wrapper.
# --------------------------------------------------------------------------- #
def simple_classify_forward(cat_feats, cont_feats, folded, *, tb_max=65536,
                            activation_dtype=jnp.float32, training=False):
    if training:
        # TODO(synk): train-mode Dropout would invalidate the affine fold; eval only.
        raise NotImplementedError("Pallas kernel implements the eval-mode forward only.")

    table, w_cont, bias = folded["table"], folded["w_cont"], folded["bias"]
    B, n_cat = cat_feats.shape
    n_cont = cont_feats.shape[1]
    n_types = table.shape[0]

    # Feature-major streams (batch on the lane axis). These two tiny transposes
    # (~12 + 16 B/sample) are the only O(B) work left outside the kernel.
    # TODO(synk): callers that can produce feature-major inputs directly make
    # even these transposes disappear.
    ids_t = jnp.asarray(cat_feats, jnp.int32).T                # [C, B]
    cont_t = cont_feats.T.astype(activation_dtype)             # [F, B]

    # Batch tiling (lane axis), no jnp.pad: the last block may be partial; its
    # out-of-range columns are computed on garbage and their stores are masked.
    tb_max = max(_LANE, (int(tb_max) // _LANE) * _LANE)        # multiple of 128
    tb = B if B <= tb_max else tb_max                          # full-dim block if it fits
    grid = (pl.cdiv(B, tb),)                                   # >= 2 steps for large B -> megacore

    # Double-buffered VMEM (sublane-padded) ~ 3 * 8 * TB * 4 B * 2 ~= 12 MiB at
    # TB = 65536 -> fits default scoped VMEM on v5e/v6e/v7x; limit set explicitly.
    act_bytes = jnp.dtype(activation_dtype).itemsize
    cost = pl.CostEstimate(
        flops=int(2 * B * (n_cont + n_cat * n_types)),
        transcendentals=int(B),
        bytes_accessed=int(B * (4 * n_cat + act_bytes * n_cont + 4)),
    )

    out = pl.pallas_call(
        folded_classify_kernel,
        out_shape=jax.ShapeDtypeStruct((1, B), jnp.float32),
        grid=grid,
        in_specs=[
            pl.BlockSpec((n_cat, tb), lambda i: (0, i)),           # ids: streamed tiles
            pl.BlockSpec((n_cont, tb), lambda i: (0, i)),          # cont: streamed tiles
            pl.BlockSpec((n_types, n_cat), lambda i: (0, 0)),      # folded table: resident
            pl.BlockSpec((n_cont, 1), lambda i: (0, 0)),           # folded cont weights: resident
            pl.BlockSpec(memory_space=pltpu.MemorySpace.SMEM),     # folded bias: SMEM scalar
        ],
        out_specs=pl.BlockSpec((1, tb), lambda i: (0, i)),         # lane-dense output
        compiler_params=pltpu.CompilerParams(
            dimension_semantics=("parallel",),                     # shard batch tiles across TCs
            vmem_limit_bytes=32 * 1024 * 1024,
        ),
        cost_estimate=cost,
    )(ids_t, cont_t, table, w_cont, bias)

    return out.reshape(B, 1)                                       # (1,B)->(B,1): free reshape


# Pure-JAX reference of the *uncollapsed* module (correctness check only).
def reference_forward(cat_feats, cont_feats, params):
    emb = params["embedding"]
    B = cat_feats.shape[0]
    cat_vec = jnp.take(emb, cat_feats, axis=0).reshape(B, -1)
    h = jnp.concatenate([cat_vec, cont_feats], axis=-1)
    for w, b in zip(params["weights"], params["biases"]):
        h = h @ w + b                                          # Dropout == identity (eval)
    return jax.nn.sigmoid(h)


if __name__ == "__main__":
    cont_nbr, cat_nbr, emd_dim, max_types = 4, 3, 4, 10
    params = init_params(cont_nbr, cat_nbr, emd_dim, max_types, hidden_size=16, seed=0)
    folded = fold_params(params, cont_nbr, cat_nbr, emd_dim)

    # Small batch: single block (block == full batch dim).
    B = 8
    k_cat, k_cont = jax.random.split(jax.random.PRNGKey(0))
    cat_feats = jax.random.randint(k_cat, (B, cat_nbr), 0, max_types, dtype=jnp.int32)
    cont_feats = jax.random.normal(k_cont, (B, cont_nbr), jnp.float32)

    out = jax.block_until_ready(simple_classify_forward(cat_feats, cont_feats, folded))
    ref = jax.block_until_ready(reference_forward(cat_feats, cont_feats, params))
    assert out.shape == (B, 1)
    assert bool(jnp.allclose(out, ref, atol=1e-5, rtol=1e-5))

    # Larger, non-multiple-of-128 batch with a small tile: exercises the
    # multi-step pipelined grid and the masked partial last block (no jnp.pad).
    B2 = 300
    k_cat2, k_cont2 = jax.random.split(jax.random.PRNGKey(1))
    cat_feats2 = jax.random.randint(k_cat2, (B2, cat_nbr), 0, max_types, dtype=jnp.int32)
    cont_feats2 = jax.random.normal(k_cont2, (B2, cont_nbr), jnp.float32)

    out2 = jax.block_until_ready(
        simple_classify_forward(cat_feats2, cont_feats2, folded, tb_max=128))
    ref2 = jax.block_until_ready(reference_forward(cat_feats2, cont_feats2, params))
    assert out2.shape == (B2, 1)
    assert bool(jnp.allclose(out2, ref2, atol=1e-5, rtol=1e-5))

    # bfloat16-streamed continuous features (halves that stream's HBM bytes);
    # accumulation stays f32 in-kernel, only input rounding differs.
    out3 = jax.block_until_ready(
        simple_classify_forward(cat_feats2, cont_feats2, folded,
                                activation_dtype=jnp.bfloat16))
    assert out3.shape == (B2, 1)
    assert bool(jnp.allclose(out3, ref2, atol=5e-3, rtol=0.0))

    print("KERNEL_OK")
</pallas_src>

<mosaic_0001>
module attributes {stable_mosaic.version = 11 : i64} {
  func.func @folded_classify_kernel(%arg0: i32, %arg1: memref<3x8xi32, #tpu.memory_space<vmem>>, %arg2: memref<4x8xf32, #tpu.memory_space<vmem>>, %arg3: memref<10x3xf32, #tpu.memory_space<vmem>>, %arg4: memref<4x1xf32, #tpu.memory_space<vmem>>, %arg5: memref<1x1xf32, #tpu.memory_space<smem>>, %arg6: memref<1x8xf32, #tpu.memory_space<vmem>>) attributes {dimension_semantics = [#tpu.dimension_semantics<parallel>], iteration_bounds = array<i64: 1>, scalar_prefetch = 0 : i64, scratch_operands = 0 : i64, tpu.core_type = #tpu.core_type<tc>, window_params = [{transform_indices = @transform_0, window_bounds = array<i64: 3, 8>}, {transform_indices = @transform_1, window_bounds = array<i64: 4, 8>}, {pipeline_mode = #tpu.pipeline_mode<synchronous>, transform_indices = @transform_2, window_bounds = array<i64: 10, 3>}, {pipeline_mode = #tpu.pipeline_mode<synchronous>, transform_indices = @transform_3, window_bounds = array<i64: 4, 1>}, {transform_indices = @transform_4, window_bounds = array<i64: 1, 1>}, {transform_indices = @transform_5, window_bounds = array<i64: 1, 8>}]} {
    %c0 = arith.constant 0 : index
    %c0_0 = arith.constant 0 : index
    %0 = vector.load %arg1[%c0, %c0_0] : memref<3x8xi32, #tpu.memory_space<vmem>>, vector<3x8xi32>
    %c0_1 = arith.constant 0 : index
    %c0_2 = arith.constant 0 : index
    %1 = vector.load %arg3[%c0_1, %c0_2] : memref<10x3xf32, #tpu.memory_space<vmem>>, vector<10x3xf32>
    %c0_3 = arith.constant 0 : index
    %c0_4 = arith.constant 0 : index
    %2 = vector.load %arg2[%c0_3, %c0_4] : memref<4x8xf32, #tpu.memory_space<vmem>>, vector<4x8xf32>
    %c0_5 = arith.constant 0 : index
    %c0_6 = arith.constant 0 : index
    %3 = vector.load %arg4[%c0_5, %c0_6] : memref<4x1xf32, #tpu.memory_space<vmem>>, vector<4x1xf32>
    %4 = vector.broadcast %3 : vector<4x1xf32> to vector<4x8xf32>
    %5 = arith.mulf %2, %4 : vector<4x8xf32>
    %cst = arith.constant dense<0.000000e+00> : vector<8xf32>
    %6 = vector.multi_reduction <add>, %5, %cst [0] : vector<4x8xf32> to vector<8xf32>
    %7 = vector.shape_cast %6 : vector<8xf32> to vector<1x8xf32>
    %8 = tpu.iota {dimensions = array<i32: 0>} : vector<10x8xi32>
    %9 = vector.extract_strided_slice %0 {offsets = [0, 0], sizes = [1, 8], strides = [1, 1]} : vector<3x8xi32> to vector<1x8xi32>
    %10 = vector.broadcast %9 : vector<1x8xi32> to vector<10x8xi32>
    %11 = arith.cmpi eq, %10, %8 : vector<10x8xi32>
    %12 = vector.extract_strided_slice %1 {offsets = [0, 0], sizes = [10, 1], strides = [1, 1]} : vector<10x3xf32> to vector<10x1xf32>
    %cst_7 = arith.constant 0.000000e+00 : f32
    %13 = vector.shape_cast %12 : vector<10x1xf32> to vector<10x1xf32>
    %14 = vector.broadcast %13 : vector<10x1xf32> to vector<10x8xf32>
    %15 = vector.broadcast %cst_7 : f32 to vector<10x8xf32>
    %16 = arith.select %11, %14, %15 : vector<10x8xi1>, vector<10x8xf32>
    %cst_8 = arith.constant dense<0.000000e+00> : vector<8xf32>
    %17 = vector.multi_reduction <add>, %16, %cst_8 [0] : vector<10x8xf32> to vector<8xf32>
    %18 = vector.shape_cast %17 : vector<8xf32> to vector<1x8xf32>
    %19 = arith.addf %7, %18 : vector<1x8xf32>
    %20 = vector.extract_strided_slice %0 {offsets = [1, 0], sizes = [1, 8], strides = [1, 1]} : vector<3x8xi32> to vector<1x8xi32>
    %21 = vector.broadcast %20 : vector<1x8xi32> to vector<10x8xi32>
    %22 = arith.cmpi eq, %21, %8 : vector<10x8xi32>
    %23 = vector.extract_strided_slice %1 {offsets = [0, 1], sizes = [10, 1], strides = [1, 1]} : vector<10x3xf32> to vector<10x1xf32>
    %cst_9 = arith.constant 0.000000e+00 : f32
    %24 = vector.shape_cast %23 : vector<10x1xf32> to vector<10x1xf32>
    %25 = vector.broadcast %24 : vector<10x1xf32> to vector<10x8xf32>
    %26 = vector.broadcast %cst_9 : f32 to vector<10x8xf32>
    %27 = arith.select %22, %25, %26 : vector<10x8xi1>, vector<10x8xf32>
    %cst_10 = arith.constant dense<0.000000e+00> : vector<8xf32>
    %28 = vector.multi_reduction <add>, %27, %cst_10 [0] : vector<10x8xf32> to vector<8xf32>
    %29 = vector.shape_cast %28 : vector<8xf32> to vector<1x8xf32>
    %30 = arith.addf %19, %29 : vector<1x8xf32>
    %31 = vector.extract_strided_slice %0 {offsets = [2, 0], sizes = [1, 8], strides = [1, 1]} : vector<3x8xi32> to vector<1x8xi32>
    %32 = vector.broadcast %31 : vector<1x8xi32> to vector<10x8xi32>
    %33 = arith.cmpi eq, %32, %8 : vector<10x8xi32>
    %34 = vector.extract_strided_slice %1 {offsets = [0, 2], sizes = [10, 1], strides = [1, 1]} : vector<10x3xf32> to vector<10x1xf32>
    %cst_11 = arith.constant 0.000000e+00 : f32
    %35 = vector.shape_cast %34 : vector<10x1xf32> to vector<10x1xf32>
    %36 = vector.broadcast %35 : vector<10x1xf32> to vector<10x8xf32>
    %37 = vector.broadcast %cst_11 : f32 to vector<10x8xf32>
    %38 = arith.select %33, %36, %37 : vector<10x8xi1>, vector<10x8xf32>
    %cst_12 = arith.constant dense<0.000000e+00> : vector<8xf32>
    %39 = vector.multi_reduction <add>, %38, %cst_12 [0] : vector<10x8xf32> to vector<8xf32>
    %40 = vector.shape_cast %39 : vector<8xf32> to vector<1x8xf32>
    %41 = arith.addf %30, %40 : vector<1x8xf32>
    %c0_13 = arith.constant 0 : index
    %c0_14 = arith.constant 0 : index
    %42 = memref.load %arg5[%c0_13, %c0_14] : memref<1x1xf32, #tpu.memory_space<smem>>
    %43 = vector.broadcast %42 : f32 to vector<1x8xf32>
    %44 = arith.addf %41, %43 : vector<1x8xf32>
    %45 = arith.negf %44 : vector<1x8xf32>
    %46 = math.exp %45 : vector<1x8xf32>
    %cst_15 = arith.constant 1.000000e+00 : f32
    %47 = vector.broadcast %cst_15 : f32 to vector<1x8xf32>
    %48 = arith.addf %47, %46 : vector<1x8xf32>
    %49 = arith.divf %47, %48 : vector<1x8xf32>
    %c0_16 = arith.constant 0 : index
    %c0_17 = arith.constant 0 : index
    %50 = vector.load %arg6[%c0_16, %c0_17] : memref<1x8xf32, #tpu.memory_space<vmem>>, vector<1x8xf32>
    tpu.vector_store %arg6[%c0_16, %c0_17], %49 {strides = array<i32>} : memref<1x8xf32, #tpu.memory_space<vmem>>, vector<1x8xf32>,
    return
  }
  func.func @transform_0(%arg0: i32) -> (i32, i32) {
    %c0_i32 = arith.constant 0 : i32
    %c0_i32_0 = arith.constant 0 : i32
    return %c0_i32, %arg0 : i32, i32
  }
  func.func @transform_1(%arg0: i32) -> (i32, i32) {
    %c0_i32 = arith.constant 0 : i32
    %c0_i32_0 = arith.constant 0 : i32
    return %c0_i32, %arg0 : i32, i32
  }
  func.func @transform_2(%arg0: i32) -> (i32, i32) {
    %c0_i32 = arith.constant 0 : i32
    %c0_i32_0 = arith.constant 0 : i32
    %c0_i32_1 = arith.constant 0 : i32
    return %c0_i32, %c0_i32_0 : i32, i32
  }
  func.func @transform_3(%arg0: i32) -> (i32, i32) {
    %c0_i32 = arith.constant 0 : i32
    %c0_i32_0 = arith.constant 0 : i32
    %c0_i32_1 = arith.constant 0 : i32
    return %c0_i32, %c0_i32_0 : i32, i32
  }
  func.func @transform_4(%arg0: i32) -> (i32, i32) {
    %c0_i32 = arith.constant 0 : i32
    %c0_i32_0 = arith.constant 0 : i32
    %c0_i32_1 = arith.constant 0 : i32
    return %c0_i32, %c0_i32_0 : i32, i32
  }
  func.func @transform_5(%arg0: i32) -> (i32, i32) {
    %c0_i32 = arith.constant 0 : i32
    %c0_i32_0 = arith.constant 0 : i32
    return %c0_i32, %arg0 : i32, i32
  }
}

</mosaic_0001>

<bundles_post_ra>
// kernel: tpu_custom_call.1
= control target key start
LH: loop header
LB: loop body
LE: loop exit
PB: predicated region body
PF: predicated region fallthrough
CT: control target
= control target key end

     0   :  { %v190_v2 = vmov 0   ;;  %s260_s0 = inlined_call_operand.vmem [shape: s32[3,8], index: 0, kind: input, shape index: {}]   ;;  %s261_s1 = inlined_call_operand.vmem [shape: f32[4,8], index: 1, kind: input, shape index: {}]   ;;  %s262_s2 = inlined_call_operand.vmem [shape: f32[10,3], index: 2, kind: input, shape index: {}]   ;;  %s263_s3 = inlined_call_operand.vmem [shape: f32[4,1], index: 3, kind: input, shape index: {}]   ;;  %s264_s4 = inlined_call_operand.<no memory space> [shape: f32[1,1], index: 4, kind: input, shape index: {}]   ;;  %s265_s5 = inlined_call_operand.hbm [shape: f32[1,8], index: 5, kind: output, shape index: {}]  }
   0x1   :  { %v26_v0 = vld [vmem:[%s263_s3] sm:$0xf]  ;;  %157 = vset.pattern.permute.xlu1 %v190_v2  ;;  %156 = vset.pattern.permute.xlu0 %v190_v2 }
   0x2   :  { %v23_v1 = vld [vmem:[%s262_s2] sm:$0xff]  ;;  %29 = vperm.xlu1 %157, %v26_v0  }
   0x3   :  { %52 = vperm.xlu0 %156, %v23_v1  }
   0x4   :  { %11 = vsyncpa [#allocation4], 0  ;;  %v24_v3 = vld [vmem:[%s262_s2 + $0x8] sm:$0x3]  ;;  %v191_v4 = vmov 1   ;;  %v192_v5 = vmov 2   ;;  %v41_v6 = vlaneseq }
   0x5   :  { %v22_v9 = vld [vmem:[%s260_s0] sm:$0x7]  ;;  %vm33_vm1 = vcmask 60416   ;;  %vm62_vm2 = vcmask 64512   ;;  %vm64_vm4 = vcmask 58368   ;;  %s193_s26 = smov [#allocation3]  }
   0x6   :  { %158 = vset.pattern.permute.xlu1 %v191_v4  ;;  %v42_v7 = vshrl.u32 %v41_v6, 7  ;;  %v25_v12 = vld [vmem:[%s261_s1] sm:$0xf]  ;;  %s143_s27 = sshll.u32 %s193_s26, 4  ;;  %vm135_vm9 = vcmask 57344   ;;  %s144_s27 = int_to_ptr.vmem [resolvable:$true] %s143_s27 }
   0x7   :  { %57 = vperm.xlu0 %156, %v24_v3   ;;  %81 = vperm.xlu1 %158, %v23_v1   ;;  %s166_s28 = scalar_lea.vmem %s144_s27, 16  ;;  %s170_s29 = scalar_lea.vmem %s144_s27, 32 }
   0x8   :  { %v46_v8 = vsub.s32 0, %v42_v7  ;;  %v76_v11 = vsub.s32 1, %v42_v7  ;;  %v43_v13 = vadd.s32 8, %v42_v7  ;;  %v102_v19 = vsub.s32 2, %v42_v7  ;;  %p167_p0 = scmp.ne.s32.totalorder %s144_s27, %s166_s28  ;;  %p171_p1 = scmp.lt.s32.totalorder %s144_s27, %s144_s27 }
   0x9   :  { %p172_p2 = scmp.lt.s32.totalorder %s170_s29, %s166_s28 }
   0xa   :  { %v47_v10 = vrot.slane %v22_v9, %v46_v8  ;;  %v77_v18 = vrot.slane %v22_v9, %v76_v11  ;;  %v103_v27 = vrot.slane %v22_v9, %v102_v19 }
   0xb   :  { %159 = vset.pattern.permute.xlu0 %v191_v4  ;;  %160 = vset.pattern.permute.xlu1 %v192_v5  ;;  %p173_p3 = por %p172_p2, %p171_p1 }
   0xc   :  { %85 = vperm.xlu0 %159, %v24_v3   ;;  %107 = vperm.xlu1 %160, %v23_v1   ;;  %vm48_vm0 = vcmp.eq.s32.totalorder %v47_v10, %v42_v7  ;;  %vm49_vm3 = vcmp.eq.s32.totalorder %v47_v10, %v43_v13  ;;  %vm78_vm5 = vcmp.eq.s32.totalorder %v77_v18, %v42_v7 }
   0xd   :  { %vm79_vm6 = vcmp.eq.s32.totalorder %v77_v18, %v43_v13  ;;  %vm104_vm7 = vcmp.eq.s32.totalorder %v103_v27, %v42_v7  ;;  %vm105_vm8 = vcmp.eq.s32.totalorder %v103_v27, %v43_v13  ;;  %p174_p4 = pnand %p173_p3, %p167_p0 }
  0x10   :  { %161 = vset.pattern.permute.xlu0 %v192_v5  ;;  %111 = vperm.xlu1 %160, %v24_v3   ;;  %v127_v3 = vstv %s264_s4 }
  0x81   :  { %v30_v14 = vpop.permute.xlu1 %29 }
  0x82   :  { %v53_v15 = vpop.permute.xlu0 %52  ;;  %v32_v16 = vmul.f32 %v30_v14, %v25_v12 }
  0x83   :  { %v60_v17 = vsel %vm48_vm0, %v53_v15, 0.0 }
  0x84   :  { %v34_v20 = vsel %vm33_vm1, %v32_v16, 0.0  ;;  %v63_v21 = vsel %vm62_vm2, %v60_v17, 0.0 }
  0x85   :  { %v35_v23 = vrot.slane %v34_v20, 4 }
  0x86   :  { %v58_v22 = vpop.permute.xlu0 %57  ;;  %v82_v25 = vpop.permute.xlu1 %81 }
  0x87   :  { %v61_v24 = vsel %vm49_vm3, %v58_v22, 0.0  ;;  %v88_v29 = vsel %vm78_vm5, %v82_v25, 0.0  ;;  %v36_v30 = vadd.f32 %v35_v23, %v34_v20 }
  0x88   :  { %v65_v26 = vsel %vm64_vm4, %v61_v24, 0.0  ;;  %v90_v36 = vsel %vm62_vm2, %v88_v29, 0.0 }
  0x89   :  { %v66_v28 = vadd.f32 %v65_v26, %v63_v21  ;;  %v37_v39 = vrot.slane %v36_v30, 2 }
  0x8b   :  { %v67_v31 = vrot.slane %v66_v28, 4  ;;  %v86_v32 = vpop.permute.xlu0 %85  ;;  %v108_v34 = vpop.permute.xlu1 %107  ;;  %v38_v49 = vadd.f32 %v37_v39, %v36_v30 }
  0x8c   :  { %v89_v33 = vsel %vm79_vm6, %v86_v32, 0.0  ;;  %v114_v41 = vsel %vm104_vm7, %v108_v34, 0.0 }
  0x8d   :  { %v68_v35 = vadd.f32 %v67_v31, %v66_v28  ;;  %v91_v37 = vsel %vm64_vm4, %v89_v33, 0.0  ;;  %v116_v47 = vsel %vm62_vm2, %v114_v41, 0.0  ;;  %v39_v55 = vrot.slane %v38_v49, 1 }
  0x8e   :  { %v92_v38 = vadd.f32 %v91_v37, %v90_v36 }
  0x8f   :  { %v69_v40 = vrot.slane %v68_v35, 2  ;;  %v112_v43 = vpop.permute.xlu1 %111  ;;  %v40_v60 = vadd.f32 %v39_v55, %v38_v49 }
  0x90   :  { %v93_v42 = vrot.slane %v92_v38, 4  ;;  %v115_v45 = vsel %vm105_vm8, %v112_v43, 0.0 }
  0x91   :  { %v70_v44 = vadd.f32 %v69_v40, %v68_v35  ;;  %v117_v48 = vsel %vm64_vm4, %v115_v45, 0.0 }
  0x92   :  { %v94_v46 = vadd.f32 %v93_v42, %v92_v38  ;;  %v118_v50 = vadd.f32 %v117_v48, %v116_v47 }
  0x93   :  { %v71_v52 = vrot.slane %v70_v44, 1 }
  0x94   :  { %v95_v51 = vrot.slane %v94_v46, 2  ;;  %v119_v53 = vrot.slane %v118_v50, 4 }
  0x95   :  { %v72_v58 = vadd.f32 %v71_v52, %v70_v44 }
  0x96   :  { %v96_v54 = vadd.f32 %v95_v51, %v94_v46  ;;  %v120_v56 = vadd.f32 %v119_v53, %v118_v50 }
  0x97   :  { %v73_v63 = vadd.f32 %v72_v58, %v40_v60 }
  0x98   :  { %v97_v57 = vrot.slane %v96_v54, 1  ;;  %v121_v59 = vrot.slane %v120_v56, 2 }
  0x9a   :  { %v98_v61 = vadd.f32 %v97_v57, %v96_v54  ;;  %v122_v62 = vadd.f32 %v121_v59, %v120_v56 }
  0x9c   :  { %v123_v0 = vrot.slane %v122_v62, 1  ;;  %v99_v1 = vadd.f32 %v98_v61, %v73_v63 }
  0x9e   :  { %v124_v2 = vadd.f32 %v123_v0, %v122_v62 }
  0xa0   :  { %v125_v4 = vadd.f32 %v124_v2, %v99_v1 }
  0xa2   :  { %v128_v5 = vadd.f32 %v127_v3, %v125_v4 }
  0xa4   :  { %v151_v6 = vmul.f32 -1.442695, %v128_v5 }
  0xa6   :  { %162 = vpow2.f32 %v151_v6 }
  0xb0   :  { %v163_v7 = vpop.eup %162 }
  0xb1   :  { %v132_v8 = vadd.f32 1.0, %v163_v7 }
  0xb3   :  { %164 = vrcp.f32 %v132_v8 }
  0xbd   :  { %v165_v9 = vpop.eup %164 }
  0xbe   :  { %136 = vst.msk [vmem:[#allocation3] sm:$0x1] %vm135_vm9, %v165_v9 }
  0xbf   :  { %177 = shalt.err (!%p174_p4)
}
  0xc0   :  { %s178_s6 = scalar_lea.hbm %s265_s5, 16 }
  0xc1   :  { %p179_p5 = scmp.ne.s32.totalorder %s265_s5, %s178_s6  ;;  %p182_p6 = scmp.lt.u32.totalorder %s178_s6, %s265_s5 }
  0xc3   :  { %p184_p7 = pnand %p182_p6, %p179_p5 }
  0xc5   :  { %187 = shalt.err (!%p184_p7)
}
  0xc6   :  { %146 = dma.vmem_to_hbm [thread:$0]  %s144_s27, 16, %s265_s5, [#allocation4]  }
  0xc7   :  { %188 = dma.done.wait [#allocation4], 16  }
  0xc8   :  { %189 = vsyncadd [#allocation4], 4294967280 }
  0xc9   :  { %150 = vsyncpa [#allocation4], 1 }

</bundles_post_ra>
